<compile_context>
chip_gen: v5e
topology: v5e:2x2
jax: 0.10.0
libtpu: 0.0.40
codegen_flags: <defaults>
</compile_context>

<pallas_src>
import functools

import jax
import jax.numpy as jnp
from jax import lax
from jax.experimental import pallas as pl
from jax.experimental.pallas import tpu as pltpu

BN_EPS = 1e-5
LANE = 128


def _round_up(x, m):
    return ((x + m - 1) // m) * m


def _conv_rows(x_ref, w_ref, b, oh_count, ksize):
    """f32 conv rows (OH, NPAD) for image `b`: K accumulated MXU dots.

    x_ref: (B, H, W*Cin) bf16 block; w_ref: (K, W*Cin, NPAD) bf16 Toeplitz weight.
    """
    npad = w_ref.shape[-1]
    acc = jnp.zeros((oh_count, npad), jnp.float32)
    for kh in range(ksize):                              # static unroll, K small
        acc = acc + jnp.dot(x_ref[b, kh:kh + oh_count, :], w_ref[kh],
                            preferred_element_type=jnp.float32)
    return acc


@functools.partial(jax.jit,
                   static_argnames=("kernel_size", "stride", "imgs_per_step"))
def conv_block_forward(x_nchw, w_oihw, bias, gamma, beta,
                       kernel_size=5, stride=1, imgs_per_step=1):
    # Conv bias is cancelled exactly by the train-mode BN mean subtraction, so it
    # is never added inside the kernel.
    # TODO(synk): reinstate the bias if an eval-mode (running-stats) path is added.
    del bias
    if stride != 1:
        # TODO(synk): general stride needs a strided Toeplitz weight; module default is 1.
        raise NotImplementedError("Pallas ConvBlock path supports stride=1 only")

    N, Cin, H, W = x_nchw.shape
    Cout = w_oihw.shape[0]
    K = kernel_size
    OH, OW = H - K + 1, W - K + 1
    WC = W * Cin                        # lanes per input row (64 for the demo)
    NCOL = OW * Cout                    # real GEMM output columns (96)
    NPAD = _round_up(NCOL, LANE)        # lane-dense output width (128)
    B = imgs_per_step                   # images per grid step
    assert N % B == 0, "imgs_per_step must divide the batch"
    nsteps = N // B
    M_TOTAL = N * OH * OW

    # ---- layout / parameter prep in XLA (tiny, no data blowup) ----------------
    # (N, H, W*Cin) bf16: a free relabel of the contiguous NHWC buffer.
    x_rows = jnp.transpose(x_nchw, (0, 2, 3, 1)).astype(jnp.bfloat16).reshape(N, H, WC)
    # Toeplitz-expanded weight: w_exp[kh, wi*Cin+ci, ow*Cout+co] = w[co,ci,kh,wi-ow]
    # (zero outside the band).  This makes the im2col implicit.
    w_khwc = jnp.transpose(w_oihw, (2, 3, 1, 0)).astype(jnp.float32)   # (K,K,Cin,Cout)
    w_exp = jnp.zeros((K, W, Cin, OW, Cout), jnp.float32)
    for ow in range(OW):                # static trace-time loop, OW small
        w_exp = w_exp.at[:, ow:ow + K, :, ow, :].set(w_khwc)
    w_exp = w_exp.reshape(K, WC, NCOL)
    w_pad = (jnp.zeros((K, WC, NPAD), jnp.float32)
             .at[:, :, :NCOL].set(w_exp).astype(jnp.bfloat16))

    cparams = pltpu.CompilerParams(
        dimension_semantics=("parallel",),
        vmem_limit_bytes=32 * 1024 * 1024)

    # ---- phase 1: streaming BN sums only (no conv output ever hits HBM) -------
    def stats_kernel(x_ref, w_ref, sums_ref):
        s = jnp.zeros((1, NPAD), jnp.float32)
        sq = jnp.zeros((1, NPAD), jnp.float32)
        for b in range(B):
            y = _conv_rows(x_ref, w_ref, b, OH, K)           # (OH, NPAD) f32
            s = s + jnp.sum(y, axis=0, keepdims=True)
            sq = sq + jnp.sum(y * y, axis=0, keepdims=True)
        sums_ref[0, pl.ds(0, 1), :] = s
        sums_ref[0, pl.ds(1, 1), :] = sq

    part = pl.pallas_call(
        stats_kernel,
        out_shape=jax.ShapeDtypeStruct((nsteps, 2, NPAD), jnp.float32),
        grid_spec=pltpu.PrefetchScalarGridSpec(
            num_scalar_prefetch=0,
            grid=(nsteps,),
            in_specs=[pl.BlockSpec((B, H, WC), lambda n: (n, 0, 0)),
                      pl.BlockSpec((K, WC, NPAD), lambda n: (0, 0, 0))],
            out_specs=pl.BlockSpec((1, 2, NPAD), lambda n: (n, 0, 0))),
        compiler_params=cparams,
    )(x_rows, w_pad)

    # ---- tiny global BN reduction -> per-lane scale / shift (wrapper, XLA) ----
    # NOTE: var = E[y^2] - mean^2 is fine at this scale; use Welford-style merging
    # if M_TOTAL grows very large.
    tot = jnp.sum(part, axis=0)                               # (2, NPAD)
    tot_c = tot[:, :NCOL].reshape(2, OW, Cout).sum(axis=1)    # (2, Cout)
    mean = tot_c[0] / M_TOTAL
    var = jnp.maximum(tot_c[1] / M_TOTAL - mean * mean, 0.0)
    scale_c = gamma.astype(jnp.float32) * lax.rsqrt(var + BN_EPS)
    shift_c = beta.astype(jnp.float32) - mean * scale_c
    # Per-lane vectors matching the (ow*Cout + co) column layout; padded lanes get
    # scale = shift = 0 so they stay exactly zero through the ReLU.
    scale_lane = (jnp.zeros((1, NPAD), jnp.float32)
                  .at[0, :NCOL].set(jnp.tile(scale_c, OW)))
    shift_lane = (jnp.zeros((1, NPAD), jnp.float32)
                  .at[0, :NCOL].set(jnp.tile(shift_c, OW)))

    # ---- phase 2: recompute conv, fused BN affine + ReLU, lane-dense store ----
    def apply_kernel(x_ref, w_ref, scale_ref, shift_ref, o_ref):
        for b in range(B):
            y = _conv_rows(x_ref, w_ref, b, OH, K)            # (OH, NPAD) f32
            o_ref[b] = jnp.maximum(y * scale_ref[...] + shift_ref[...], 0.0)

    out_rows = pl.pallas_call(
        apply_kernel,
        out_shape=jax.ShapeDtypeStruct((N, OH, NPAD), jnp.float32),
        grid_spec=pltpu.PrefetchScalarGridSpec(
            num_scalar_prefetch=0,
            grid=(nsteps,),
            in_specs=[pl.BlockSpec((B, H, WC), lambda n: (n, 0, 0)),
                      pl.BlockSpec((K, WC, NPAD), lambda n: (0, 0, 0)),
                      pl.BlockSpec((1, NPAD), lambda n: (0, 0)),
                      pl.BlockSpec((1, NPAD), lambda n: (0, 0))],
            out_specs=pl.BlockSpec((B, OH, NPAD), lambda n: (n, 0, 0))),
        compiler_params=cparams,
    )(x_rows, w_pad, scale_lane, shift_lane)

    # ---- slice real columns, reshape to NCHW (tiny result, outside kernels) ---
    out_nhwc = out_rows[:, :, :NCOL].reshape(N, OH, OW, Cout)
    return jnp.transpose(out_nhwc, (0, 3, 1, 2))


def _reference(x_nchw, w_oihw, bias, gamma, beta):
    # Pure-JAX reference mirroring PyTorch ConvBlock forward (BN in train mode).
    y = lax.conv_general_dilated(
        x_nchw.astype(jnp.float32),
        w_oihw.astype(jnp.float32),
        window_strides=(1, 1),
        padding="VALID",
        dimension_numbers=("NCHW", "OIHW", "NCHW"),
    ) + bias[None, :, None, None]
    mean = jnp.mean(y, axis=(0, 2, 3), keepdims=True)
    var = jnp.mean((y - mean) ** 2, axis=(0, 2, 3), keepdims=True)
    y = (y - mean) * lax.rsqrt(var + BN_EPS)
    y = y * gamma[None, :, None, None] + beta[None, :, None, None]
    return jnp.maximum(y, 0.0)


if __name__ == "__main__":
    # Small shapes consistent with the module: N=2, Cin=4, H=W=16, Cout=8, K=5.
    N, Cin, H, W = 2, 4, 16, 16
    Cout, K = 8, 5

    key = jax.random.PRNGKey(0)
    kx, kw, kb, kg, kbeta = jax.random.split(key, 5)

    x = jax.random.normal(kx, (N, Cin, H, W), dtype=jnp.float32)
    conv_w = 0.1 * jax.random.normal(kw, (Cout, Cin, K, K), dtype=jnp.float32)
    conv_b = 0.1 * jax.random.normal(kb, (Cout,), dtype=jnp.float32)
    bn_gamma = 1.0 + 0.1 * jax.random.normal(kg, (Cout,), dtype=jnp.float32)
    bn_beta = 0.1 * jax.random.normal(kbeta, (Cout,), dtype=jnp.float32)

    out = conv_block_forward(x, conv_w, conv_b, bn_gamma, bn_beta,
                             kernel_size=K, stride=1)
    out = jax.block_until_ready(out)
    assert out.shape == (N, Cout, H - K + 1, W - K + 1), out.shape

    # Tight check vs a reference that mirrors the kernel's bf16 MXU-input rounding.
    xq = x.astype(jnp.bfloat16).astype(jnp.float32)
    wq = conv_w.astype(jnp.bfloat16).astype(jnp.float32)
    ref_q = jax.block_until_ready(_reference(xq, wq, conv_b, bn_gamma, bn_beta))
    assert jnp.allclose(out, ref_q, atol=1e-3, rtol=1e-3), \
        float(jnp.max(jnp.abs(out - ref_q)))

    # Loose sanity check vs the full-f32 reference (bf16 input rounding ~1e-2).
    ref_f = jax.block_until_ready(_reference(x, conv_w, conv_b, bn_gamma, bn_beta))
    assert jnp.allclose(out, ref_f, atol=5e-2, rtol=5e-2), \
        float(jnp.max(jnp.abs(out - ref_f)))

    print("KERNEL_OK")
</pallas_src>

<mosaic_0001>
module attributes {stable_mosaic.version = 11 : i64} {
  func.func @stats_kernel(%arg0: i32, %arg1: memref<1x16x64xbf16, #tpu.memory_space<vmem>>, %arg2: memref<5x64x128xbf16, #tpu.memory_space<vmem>>, %arg3: memref<1x2x128xf32, #tpu.memory_space<vmem>>) attributes {dimension_semantics = [#tpu.dimension_semantics<parallel>], iteration_bounds = array<i64: 2>, scalar_prefetch = 0 : i64, scratch_operands = 0 : i64, tpu.core_type = #tpu.core_type<tc>, window_params = [{transform_indices = @transform_0, window_bounds = array<i64: 1, 16, 64>}, {pipeline_mode = #tpu.pipeline_mode<synchronous>, transform_indices = @transform_1, window_bounds = array<i64: 5, 64, 128>}, {transform_indices = @transform_2, window_bounds = array<i64: 1, 2, 128>}]} {
    %cst = arith.constant 0.000000e+00 : f32
    %0 = vector.broadcast %cst : f32 to vector<1x128xf32>
    %cst_0 = arith.constant 0.000000e+00 : f32
    %1 = vector.broadcast %cst_0 : f32 to vector<1x128xf32>
    %cst_1 = arith.constant 0.000000e+00 : f32
    %2 = vector.broadcast %cst_1 : f32 to vector<12x128xf32>
    %c0 = arith.constant 0 : index
    %c0_2 = arith.constant 0 : index
    %c0_3 = arith.constant 0 : index
    %3 = vector.load %arg1[%c0, %c0_2, %c0_3] : memref<1x16x64xbf16, #tpu.memory_space<vmem>>, vector<1x12x64xbf16>
    %4 = vector.shape_cast %3 : vector<1x12x64xbf16> to vector<12x64xbf16>
    %c0_4 = arith.constant 0 : index
    %c0_5 = arith.constant 0 : index
    %c0_6 = arith.constant 0 : index
    %5 = vector.load %arg2[%c0_4, %c0_5, %c0_6] : memref<5x64x128xbf16, #tpu.memory_space<vmem>>, vector<1x64x128xbf16>
    %6 = vector.shape_cast %5 : vector<1x64x128xbf16> to vector<64x128xbf16>
    %cst_7 = arith.constant dense<0.000000e+00> : vector<12x128xf32>
    %7 = tpu.matmul %4, %6, %cst_7 {dimension_numbers = #tpu.dot_dimension_numbers<[1], [0], [0], [1], [0, 0, 1, 1], [], []>} : vector<12x64xbf16>, vector<64x128xbf16>, vector<12x128xf32> -> vector<12x128xf32>
    %8 = arith.addf %2, %7 : vector<12x128xf32>
    %c0_8 = arith.constant 0 : index
    %c1 = arith.constant 1 : index
    %c0_9 = arith.constant 0 : index
    %9 = vector.load %arg1[%c0_8, %c1, %c0_9] : memref<1x16x64xbf16, #tpu.memory_space<vmem>>, vector<1x12x64xbf16>
    %10 = vector.shape_cast %9 : vector<1x12x64xbf16> to vector<12x64xbf16>
    %c1_10 = arith.constant 1 : index
    %c0_11 = arith.constant 0 : index
    %c0_12 = arith.constant 0 : index
    %11 = vector.load %arg2[%c1_10, %c0_11, %c0_12] : memref<5x64x128xbf16, #tpu.memory_space<vmem>>, vector<1x64x128xbf16>
    %12 = vector.shape_cast %11 : vector<1x64x128xbf16> to vector<64x128xbf16>
    %cst_13 = arith.constant dense<0.000000e+00> : vector<12x128xf32>
    %13 = tpu.matmul %10, %12, %cst_13 {dimension_numbers = #tpu.dot_dimension_numbers<[1], [0], [0], [1], [0, 0, 1, 1], [], []>} : vector<12x64xbf16>, vector<64x128xbf16>, vector<12x128xf32> -> vector<12x128xf32>
    %14 = arith.addf %8, %13 : vector<12x128xf32>
    %c0_14 = arith.constant 0 : index
    %c2 = arith.constant 2 : index
    %c0_15 = arith.constant 0 : index
    %15 = vector.load %arg1[%c0_14, %c2, %c0_15] : memref<1x16x64xbf16, #tpu.memory_space<vmem>>, vector<1x12x64xbf16>
    %16 = vector.shape_cast %15 : vector<1x12x64xbf16> to vector<12x64xbf16>
    %c2_16 = arith.constant 2 : index
    %c0_17 = arith.constant 0 : index
    %c0_18 = arith.constant 0 : index
    %17 = vector.load %arg2[%c2_16, %c0_17, %c0_18] : memref<5x64x128xbf16, #tpu.memory_space<vmem>>, vector<1x64x128xbf16>
    %18 = vector.shape_cast %17 : vector<1x64x128xbf16> to vector<64x128xbf16>
    %cst_19 = arith.constant dense<0.000000e+00> : vector<12x128xf32>
    %19 = tpu.matmul %16, %18, %cst_19 {dimension_numbers = #tpu.dot_dimension_numbers<[1], [0], [0], [1], [0, 0, 1, 1], [], []>} : vector<12x64xbf16>, vector<64x128xbf16>, vector<12x128xf32> -> vector<12x128xf32>
    %20 = arith.addf %14, %19 : vector<12x128xf32>
    %c0_20 = arith.constant 0 : index
    %c3 = arith.constant 3 : index
    %c0_21 = arith.constant 0 : index
    %21 = vector.load %arg1[%c0_20, %c3, %c0_21] : memref<1x16x64xbf16, #tpu.memory_space<vmem>>, vector<1x12x64xbf16>
    %22 = vector.shape_cast %21 : vector<1x12x64xbf16> to vector<12x64xbf16>
    %c3_22 = arith.constant 3 : index
    %c0_23 = arith.constant 0 : index
    %c0_24 = arith.constant 0 : index
    %23 = vector.load %arg2[%c3_22, %c0_23, %c0_24] : memref<5x64x128xbf16, #tpu.memory_space<vmem>>, vector<1x64x128xbf16>
    %24 = vector.shape_cast %23 : vector<1x64x128xbf16> to vector<64x128xbf16>
    %cst_25 = arith.constant dense<0.000000e+00> : vector<12x128xf32>
    %25 = tpu.matmul %22, %24, %cst_25 {dimension_numbers = #tpu.dot_dimension_numbers<[1], [0], [0], [1], [0, 0, 1, 1], [], []>} : vector<12x64xbf16>, vector<64x128xbf16>, vector<12x128xf32> -> vector<12x128xf32>
    %26 = arith.addf %20, %25 : vector<12x128xf32>
    %c0_26 = arith.constant 0 : index
    %c4 = arith.constant 4 : index
    %c0_27 = arith.constant 0 : index
    %27 = vector.load %arg1[%c0_26, %c4, %c0_27] : memref<1x16x64xbf16, #tpu.memory_space<vmem>>, vector<1x12x64xbf16>
    %28 = vector.shape_cast %27 : vector<1x12x64xbf16> to vector<12x64xbf16>
    %c4_28 = arith.constant 4 : index
    %c0_29 = arith.constant 0 : index
    %c0_30 = arith.constant 0 : index
    %29 = vector.load %arg2[%c4_28, %c0_29, %c0_30] : memref<5x64x128xbf16, #tpu.memory_space<vmem>>, vector<1x64x128xbf16>
    %30 = vector.shape_cast %29 : vector<1x64x128xbf16> to vector<64x128xbf16>
    %cst_31 = arith.constant dense<0.000000e+00> : vector<12x128xf32>
    %31 = tpu.matmul %28, %30, %cst_31 {dimension_numbers = #tpu.dot_dimension_numbers<[1], [0], [0], [1], [0, 0, 1, 1], [], []>} : vector<12x64xbf16>, vector<64x128xbf16>, vector<12x128xf32> -> vector<12x128xf32>
    %32 = arith.addf %26, %31 : vector<12x128xf32>
    %cst_32 = arith.constant dense<0.000000e+00> : vector<128xf32>
    %33 = vector.multi_reduction <add>, %32, %cst_32 [0] : vector<12x128xf32> to vector<128xf32>
    %34 = vector.shape_cast %33 : vector<128xf32> to vector<1x128xf32>
    %35 = arith.addf %0, %34 : vector<1x128xf32>
    %36 = arith.mulf %32, %32 : vector<12x128xf32>
    %cst_33 = arith.constant dense<0.000000e+00> : vector<128xf32>
    %37 = vector.multi_reduction <add>, %36, %cst_33 [0] : vector<12x128xf32> to vector<128xf32>
    %38 = vector.shape_cast %37 : vector<128xf32> to vector<1x128xf32>
    %39 = arith.addf %1, %38 : vector<1x128xf32>
    %c0_34 = arith.constant 0 : index
    %c0_35 = arith.constant 0 : index
    %c0_36 = arith.constant 0 : index
    %40 = vector.load %arg3[%c0_34, %c0_35, %c0_36] : memref<1x2x128xf32, #tpu.memory_space<vmem>>, vector<1x1x128xf32>
    %41 = vector.shape_cast %40 : vector<1x1x128xf32> to vector<1x128xf32>
    %42 = vector.shape_cast %35 : vector<1x128xf32> to vector<1x1x128xf32>
    tpu.vector_store %arg3[%c0_34, %c0_35, %c0_36], %42 {strides = array<i32>} : memref<1x2x128xf32, #tpu.memory_space<vmem>>, vector<1x1x128xf32>,
    %c0_37 = arith.constant 0 : index
    %c1_38 = arith.constant 1 : index
    %c0_39 = arith.constant 0 : index
    %43 = vector.load %arg3[%c0_37, %c1_38, %c0_39] : memref<1x2x128xf32, #tpu.memory_space<vmem>>, vector<1x1x128xf32>
    %44 = vector.shape_cast %43 : vector<1x1x128xf32> to vector<1x128xf32>
    %45 = vector.shape_cast %39 : vector<1x128xf32> to vector<1x1x128xf32>
    tpu.vector_store %arg3[%c0_37, %c1_38, %c0_39], %45 {strides = array<i32>} : memref<1x2x128xf32, #tpu.memory_space<vmem>>, vector<1x1x128xf32>,
    return
  }
  func.func @transform_0(%arg0: i32) -> (i32, i32, i32) {
    %c0_i32 = arith.constant 0 : i32
    %c0_i32_0 = arith.constant 0 : i32
    %c0_i32_1 = arith.constant 0 : i32
    return %arg0, %c0_i32, %c0_i32_0 : i32, i32, i32
  }
  func.func @transform_1(%arg0: i32) -> (i32, i32, i32) {
    %c0_i32 = arith.constant 0 : i32
    %c0_i32_0 = arith.constant 0 : i32
    %c0_i32_1 = arith.constant 0 : i32
    %c0_i32_2 = arith.constant 0 : i32
    return %c0_i32, %c0_i32_0, %c0_i32_1 : i32, i32, i32
  }
  func.func @transform_2(%arg0: i32) -> (i32, i32, i32) {
    %c0_i32 = arith.constant 0 : i32
    %c0_i32_0 = arith.constant 0 : i32
    %c0_i32_1 = arith.constant 0 : i32
    return %arg0, %c0_i32, %c0_i32_0 : i32, i32, i32
  }
}

module attributes {stable_mosaic.version = 11 : i64} {
  func.func @apply_kernel(%arg0: i32, %arg1: memref<1x16x64xbf16, #tpu.memory_space<vmem>>, %arg2: memref<5x64x128xbf16, #tpu.memory_space<vmem>>, %arg3: memref<1x128xf32, #tpu.memory_space<vmem>>, %arg4: memref<1x128xf32, #tpu.memory_space<vmem>>, %arg5: memref<1x12x128xf32, #tpu.memory_space<vmem>>) attributes {dimension_semantics = [#tpu.dimension_semantics<parallel>], iteration_bounds = array<i64: 2>, scalar_prefetch = 0 : i64, scratch_operands = 0 : i64, tpu.core_type = #tpu.core_type<tc>, window_params = [{transform_indices = @transform_0, window_bounds = array<i64: 1, 16, 64>}, {pipeline_mode = #tpu.pipeline_mode<synchronous>, transform_indices = @transform_1, window_bounds = array<i64: 5, 64, 128>}, {pipeline_mode = #tpu.pipeline_mode<synchronous>, transform_indices = @transform_2, window_bounds = array<i64: 1, 128>}, {pipeline_mode = #tpu.pipeline_mode<synchronous>, transform_indices = @transform_3, window_bounds = array<i64: 1, 128>}, {transform_indices = @transform_4, window_bounds = array<i64: 1, 12, 128>}]} {
    %cst = arith.constant 0.000000e+00 : f32
    %0 = vector.broadcast %cst : f32 to vector<12x128xf32>
    %c0 = arith.constant 0 : index
    %c0_0 = arith.constant 0 : index
    %c0_1 = arith.constant 0 : index
    %1 = vector.load %arg1[%c0, %c0_0, %c0_1] : memref<1x16x64xbf16, #tpu.memory_space<vmem>>, vector<1x12x64xbf16>
    %2 = vector.shape_cast %1 : vector<1x12x64xbf16> to vector<12x64xbf16>
    %c0_2 = arith.constant 0 : index
    %c0_3 = arith.constant 0 : index
    %c0_4 = arith.constant 0 : index
    %3 = vector.load %arg2[%c0_2, %c0_3, %c0_4] : memref<5x64x128xbf16, #tpu.memory_space<vmem>>, vector<1x64x128xbf16>
    %4 = vector.shape_cast %3 : vector<1x64x128xbf16> to vector<64x128xbf16>
    %cst_5 = arith.constant dense<0.000000e+00> : vector<12x128xf32>
    %5 = tpu.matmul %2, %4, %cst_5 {dimension_numbers = #tpu.dot_dimension_numbers<[1], [0], [0], [1], [0, 0, 1, 1], [], []>} : vector<12x64xbf16>, vector<64x128xbf16>, vector<12x128xf32> -> vector<12x128xf32>
    %6 = arith.addf %0, %5 : vector<12x128xf32>
    %c0_6 = arith.constant 0 : index
    %c1 = arith.constant 1 : index
    %c0_7 = arith.constant 0 : index
    %7 = vector.load %arg1[%c0_6, %c1, %c0_7] : memref<1x16x64xbf16, #tpu.memory_space<vmem>>, vector<1x12x64xbf16>
    %8 = vector.shape_cast %7 : vector<1x12x64xbf16> to vector<12x64xbf16>
    %c1_8 = arith.constant 1 : index
    %c0_9 = arith.constant 0 : index
    %c0_10 = arith.constant 0 : index
    %9 = vector.load %arg2[%c1_8, %c0_9, %c0_10] : memref<5x64x128xbf16, #tpu.memory_space<vmem>>, vector<1x64x128xbf16>
    %10 = vector.shape_cast %9 : vector<1x64x128xbf16> to vector<64x128xbf16>
    %cst_11 = arith.constant dense<0.000000e+00> : vector<12x128xf32>
    %11 = tpu.matmul %8, %10, %cst_11 {dimension_numbers = #tpu.dot_dimension_numbers<[1], [0], [0], [1], [0, 0, 1, 1], [], []>} : vector<12x64xbf16>, vector<64x128xbf16>, vector<12x128xf32> -> vector<12x128xf32>
    %12 = arith.addf %6, %11 : vector<12x128xf32>
    %c0_12 = arith.constant 0 : index
    %c2 = arith.constant 2 : index
    %c0_13 = arith.constant 0 : index
    %13 = vector.load %arg1[%c0_12, %c2, %c0_13] : memref<1x16x64xbf16, #tpu.memory_space<vmem>>, vector<1x12x64xbf16>
    %14 = vector.shape_cast %13 : vector<1x12x64xbf16> to vector<12x64xbf16>
    %c2_14 = arith.constant 2 : index
    %c0_15 = arith.constant 0 : index
    %c0_16 = arith.constant 0 : index
    %15 = vector.load %arg2[%c2_14, %c0_15, %c0_16] : memref<5x64x128xbf16, #tpu.memory_space<vmem>>, vector<1x64x128xbf16>
    %16 = vector.shape_cast %15 : vector<1x64x128xbf16> to vector<64x128xbf16>
    %cst_17 = arith.constant dense<0.000000e+00> : vector<12x128xf32>
    %17 = tpu.matmul %14, %16, %cst_17 {dimension_numbers = #tpu.dot_dimension_numbers<[1], [0], [0], [1], [0, 0, 1, 1], [], []>} : vector<12x64xbf16>, vector<64x128xbf16>, vector<12x128xf32> -> vector<12x128xf32>
    %18 = arith.addf %12, %17 : vector<12x128xf32>
    %c0_18 = arith.constant 0 : index
    %c3 = arith.constant 3 : index
    %c0_19 = arith.constant 0 : index
    %19 = vector.load %arg1[%c0_18, %c3, %c0_19] : memref<1x16x64xbf16, #tpu.memory_space<vmem>>, vector<1x12x64xbf16>
    %20 = vector.shape_cast %19 : vector<1x12x64xbf16> to vector<12x64xbf16>
    %c3_20 = arith.constant 3 : index
    %c0_21 = arith.constant 0 : index
    %c0_22 = arith.constant 0 : index
    %21 = vector.load %arg2[%c3_20, %c0_21, %c0_22] : memref<5x64x128xbf16, #tpu.memory_space<vmem>>, vector<1x64x128xbf16>
    %22 = vector.shape_cast %21 : vector<1x64x128xbf16> to vector<64x128xbf16>
    %cst_23 = arith.constant dense<0.000000e+00> : vector<12x128xf32>
    %23 = tpu.matmul %20, %22, %cst_23 {dimension_numbers = #tpu.dot_dimension_numbers<[1], [0], [0], [1], [0, 0, 1, 1], [], []>} : vector<12x64xbf16>, vector<64x128xbf16>, vector<12x128xf32> -> vector<12x128xf32>
    %24 = arith.addf %18, %23 : vector<12x128xf32>
    %c0_24 = arith.constant 0 : index
    %c4 = arith.constant 4 : index
    %c0_25 = arith.constant 0 : index
    %25 = vector.load %arg1[%c0_24, %c4, %c0_25] : memref<1x16x64xbf16, #tpu.memory_space<vmem>>, vector<1x12x64xbf16>
    %26 = vector.shape_cast %25 : vector<1x12x64xbf16> to vector<12x64xbf16>
    %c4_26 = arith.constant 4 : index
    %c0_27 = arith.constant 0 : index
    %c0_28 = arith.constant 0 : index
    %27 = vector.load %arg2[%c4_26, %c0_27, %c0_28] : memref<5x64x128xbf16, #tpu.memory_space<vmem>>, vector<1x64x128xbf16>
    %28 = vector.shape_cast %27 : vector<1x64x128xbf16> to vector<64x128xbf16>
    %cst_29 = arith.constant dense<0.000000e+00> : vector<12x128xf32>
    %29 = tpu.matmul %26, %28, %cst_29 {dimension_numbers = #tpu.dot_dimension_numbers<[1], [0], [0], [1], [0, 0, 1, 1], [], []>} : vector<12x64xbf16>, vector<64x128xbf16>, vector<12x128xf32> -> vector<12x128xf32>
    %30 = arith.addf %24, %29 : vector<12x128xf32>
    %c0_30 = arith.constant 0 : index
    %c0_31 = arith.constant 0 : index
    %31 = vector.load %arg3[%c0_30, %c0_31] : memref<1x128xf32, #tpu.memory_space<vmem>>, vector<1x128xf32>
    %32 = vector.broadcast %31 : vector<1x128xf32> to vector<12x128xf32>
    %33 = arith.mulf %30, %32 : vector<12x128xf32>
    %c0_32 = arith.constant 0 : index
    %c0_33 = arith.constant 0 : index
    %34 = vector.load %arg4[%c0_32, %c0_33] : memref<1x128xf32, #tpu.memory_space<vmem>>, vector<1x128xf32>
    %35 = vector.broadcast %34 : vector<1x128xf32> to vector<12x128xf32>
    %36 = arith.addf %33, %35 : vector<12x128xf32>
    %cst_34 = arith.constant 0.000000e+00 : f32
    %37 = vector.broadcast %cst_34 : f32 to vector<12x128xf32>
    %38 = arith.maximumf %36, %37 : vector<12x128xf32>
    %c0_35 = arith.constant 0 : index
    %c0_36 = arith.constant 0 : index
    %c0_37 = arith.constant 0 : index
    %39 = vector.load %arg5[%c0_35, %c0_36, %c0_37] : memref<1x12x128xf32, #tpu.memory_space<vmem>>, vector<1x12x128xf32>
    %40 = vector.shape_cast %39 : vector<1x12x128xf32> to vector<12x128xf32>
    %41 = vector.shape_cast %38 : vector<12x128xf32> to vector<1x12x128xf32>
    tpu.vector_store %arg5[%c0_35, %c0_36, %c0_37], %41 {strides = array<i32>} : memref<1x12x128xf32, #tpu.memory_space<vmem>>, vector<1x12x128xf32>,
    return
  }
  func.func @transform_0(%arg0: i32) -> (i32, i32, i32) {
    %c0_i32 = arith.constant 0 : i32
    %c0_i32_0 = arith.constant 0 : i32
    %c0_i32_1 = arith.constant 0 : i32
    return %arg0, %c0_i32, %c0_i32_0 : i32, i32, i32
  }
  func.func @transform_1(%arg0: i32) -> (i32, i32, i32) {
    %c0_i32 = arith.constant 0 : i32
    %c0_i32_0 = arith.constant 0 : i32
    %c0_i32_1 = arith.constant 0 : i32
    %c0_i32_2 = arith.constant 0 : i32
    return %c0_i32, %c0_i32_0, %c0_i32_1 : i32, i32, i32
  }
  func.func @transform_2(%arg0: i32) -> (i32, i32) {
    %c0_i32 = arith.constant 0 : i32
    %c0_i32_0 = arith.constant 0 : i32
    %c0_i32_1 = arith.constant 0 : i32
    return %c0_i32, %c0_i32_0 : i32, i32
  }
  func.func @transform_3(%arg0: i32) -> (i32, i32) {
    %c0_i32 = arith.constant 0 : i32
    %c0_i32_0 = arith.constant 0 : i32
    %c0_i32_1 = arith.constant 0 : i32
    return %c0_i32, %c0_i32_0 : i32, i32
  }
  func.func @transform_4(%arg0: i32) -> (i32, i32, i32) {
    %c0_i32 = arith.constant 0 : i32
    %c0_i32_0 = arith.constant 0 : i32
    %c0_i32_1 = arith.constant 0 : i32
    return %arg0, %c0_i32, %c0_i32_0 : i32, i32, i32
  }
}

</mosaic_0001>

<bundles_post_ra>
// kernel: conv_block_forward.2
= control target key start
LH: loop header
LB: loop body
LE: loop exit
PB: predicated region body
PF: predicated region fallthrough
CT: control target
= control target key end

     0   :  { %s694_s9 = smov 0   ;;  %s787_s0 = inlined_call_operand.vmem [shape: bf16[2,16,64], index: 0, kind: input, shape index: {}]   ;;  %s788_s1 = inlined_call_operand.vmem [shape: bf16[5,64,128], index: 1, kind: input, shape index: {}]   ;;  %s789_s2 = inlined_call_operand.vmem [shape: f32[2,2,128], index: 2, kind: output, shape index: {}]  }
   0x1 LB: > { %s515_s10 = sadd.s32 4294967295, %s677_s9   ;;  %p519_p0 = scmp.ge.s32.totalorder %s677_s9, 1  ;;  %s677_s9 = sphi %s694_s9, %s12_s9  }
   0x2   : > { %p112_p1 = scmp.lt.s32.totalorder %s677_s9, 3 }
   0x4   : > { %p113_p2 = pnand %p519_p0, %p112_p1 }
   0x5   : > { %p133_p3 = scmp.lt.s32.totalorder (!%p113_p2), %s515_s10, 1 }
   0x6   : > { %116 = sbr.rel (%p113_p2) target bundleno = 197 (0xc5), region = 28 }
   0xb   : > { %v650_v0 = vld [vmem:[%s788_s1 + $0x38] sm:$0xff]  ;;  %v649_v4 = vld [vmem:[%s788_s1 + $0x30] sm:$0xff]  ;;  %s791_s10 = smov (!%p133_p3, %s515_s10), 1  ;;  %v648_v8 = vld [vmem:[%s788_s1 + $0x28] sm:$0xff]  ;;  %vm199_vm0 = vcmask 523264   ;;  %vm439_vm1 = vcmask 1043456  }
   0xc   : > { %v646_v1 = vld [vmem:[%s788_s1 + $0x18] sm:$0xff]  ;;  %207 = vmatpush.bf16.msra.mxu0 %v650_v0  ;;  %v645_v5 = vld [vmem:[%s788_s1 + $0x10] sm:$0xff]  ;;  %s642_s27 = sshll.u32 %s791_s10, 3  ;;  %v644_v9 = vld [vmem:[%s788_s1 + $0x8] sm:$0xff]  ;;  %s522_s29 = sshll.u32 %s791_s10, 1 }
   0xd   : > { %v654_v2 = vld [vmem:[%s788_s1 + $0x58] sm:$0xff]  ;;  %251 = vmatpush.bf16.msra.mxu1 %v646_v1  ;;  %v653_v6 = vld [vmem:[%s788_s1 + $0x50] sm:$0xff]  ;;  %s738_s6 = scalar_lea.vmem %s787_s0, %s642_s27  ;;  %v652_v13 = vld [vmem:[%s788_s1 + $0x48] sm:$0xff]  ;;  %s141_s4 = scalar_lea.vmem %s789_s2, %s522_s29 }
   0xe   : > { %v658_v3 = vld [vmem:[%s788_s1 + $0x78] sm:$0xff]  ;;  %306 = vmatpush.bf16.msra.mxu2 %v654_v2  ;;  %v657_v7 = vld [vmem:[%s788_s1 + $0x70] sm:$0xff]  ;;  %v143_v10 = vld [vmem:[%s738_s6] sm:$0xff]  }
   0xf   : > { %370 = vmatpush.bf16.msra.mxu3 %v658_v3  ;;  %v153_v11 = vld [vmem:[%s738_s6 + $0x4] sm:$0x7]  ;;  %v656_v14 = vld [vmem:[%s788_s1 + $0x68] sm:$0xff]  ;;  %v165_v15 = vunpack.c.l.b16 %v143_v10  ;;  %v261_v17 = vld [vmem:[%s738_s6] sm:$0xe]  ;;  %v329_v18 = vunpack.c.h.b16 %v143_v10 }
  0x10   : > { %208 = vmatpush.bf16.msra.mxu0 %v649_v4  ;;  %v144_v12 = vld [vmem:[%s738_s6 + $0x4] sm:$0x3]  ;;  %v166_v16 = vunpack.c.l.b16 %v153_v11  ;;  %v272_v19 = vunpack.c.l.b16 %v261_v17  ;;  %v662_v32 = vld [vmem:[%s788_s1 + $0x98] sm:$0xff]  ;;  %v661_v40 = vld [vmem:[%s788_s1 + $0x90] sm:$0xff] }
  0x11   : > { %252 = vmatpush.bf16.msra.mxu1 %v645_v5  ;;  %v218_v21 = vunpack.c.l.b16 %v144_v12  ;;  %v647_v22 = vld [vmem:[%s788_s1 + $0x20] sm:$0xff]  ;;  %v660_v42 = vld [vmem:[%s788_s1 + $0x88] sm:$0xff] }
  0x12   : > { %307 = vmatpush.bf16.msra.mxu2 %v653_v6  ;;  %v167_v20 = vpack.c.b16 %v166_v16, %v165_v15  ;;  %v643_v23 = vld [vmem:[%s788_s1] sm:$0xff]  ;;  %v273_v24 = vpack.c.b16 %v166_v16, %v272_v19  ;;  %v330_v25 = vpack.c.b16 %v329_v18, %v272_v19 }
  0x13   : > { %371 = vmatpush.bf16.msra.mxu3 %v657_v7  ;;  %v651_v26 = vld [vmem:[%s788_s1 + $0x40] sm:$0xff]  ;;  %v219_v34 = vpack.c.b16 %v218_v21, %v165_v15 }
  0x14   : > { %209 = vmatpush.bf16.msra.mxu0 %v648_v8  ;;  %v655_v27 = vld [vmem:[%s788_s1 + $0x60] sm:$0xff]  ;;  %v169_v28 = vshrl.u32 %v167_v20, 16  ;;  %v171_v29 = vshll.u32 %v167_v20, 16  ;;  %v332_v30 = vshrl.u32 %v330_v25, 16  ;;  %v335_v31 = vshll.u32 %v330_v25, 16 }
  0x15   : > { %253 = vmatpush.bf16.msra.mxu1 %v644_v9  ;;  %v274_v35 = vrot.slane %v273_v24, 1  ;;  %v382_v41 = vld [vmem:[%s738_s6] sm:$0xc] }
  0x16   : > { %308 = vmatpush.bf16.msra.mxu2 %v652_v13  ;;  %v173_v33 = vrot.slane %v171_v29, 1  ;;  %v334_v36 = vrot.slane %v332_v30, 1  ;;  %v337_v37 = vrot.slane %v335_v31, 2  ;;  %v393_v43 = vunpack.c.l.b16 %v382_v41  ;;  %v659_v44 = vld [vmem:[%s788_s1 + $0x80] sm:$0xff] }
  0x17   : > { %372 = vmatpush.bf16.msra.mxu3 %v656_v14 }
  0x18   : > { %210 = vmatpush.bf16.msra.mxu0 %v647_v22  ;;  %v174_v38 = vor.u32 %v173_v33, %v169_v28  ;;  %v338_v39 = vor.u32 %v337_v37, %v334_v36  ;;  %v394_v45 = vpack.c.b16 %v329_v18, %v393_v43 }
  0x19   : > { %254 = vmatpush.bf16.msra.mxu1 %v643_v23 }
  0x1a   : > { %309 = vmatpush.bf16.msra.mxu2 %v651_v26  ;;  %v395_v46 = vrot.slane %v394_v45, 2 }
  0x1b   : > { %373 = vmatpush.bf16.msra.mxu3 %v655_v27  ;;  %547 = vmatmul.msk.bf16.vlgmr.msra.gmra.mxu0 %vm199_vm0, %v174_v38 }
  0x1c   : > { %427 = vmatpush.bf16.msrb.mxu0 %v662_v32  ;;  %564 = vmatmul.msk.bf16.vlgmr.msra.gmra.mxu1 %vm199_vm0, %v219_v34 }
  0x1d   : > { %589 = vmatmul.msk.bf16.vlgmr.msra.gmra.mxu2 %vm199_vm0, %v274_v35 }
  0x1e   : > { %614 = vmatmul.msk.bf16.vlgmr.msra.gmra.mxu3 %vm199_vm0, %v338_v39 }
  0x20   : > { %428 = vmatpush.bf16.msrb.mxu0 %v661_v40 }
  0x24   : > { %429 = vmatpush.bf16.msrb.mxu0 %v660_v42 }
  0x28   : > { %430 = vmatpush.bf16.msrb.mxu0 %v659_v44 }
  0x2b   : > { %639 = vmatmul.msk.bf16.vlgmr.msrb.gmra.mxu0 %vm199_vm0, %v395_v46 }
  0x98   : > { %v212_v47 = vpop.f32.mrf.mxu0 }
  0x99   : > { %v256_v48 = vpop.f32.mrf.mxu1 }
  0x9a   : > { %v257_v53 = vadd.f32 %v256_v48, %v212_v47 }
  0xa0   : > { %v311_v49 = vpop.f32.mrf.mxu2  ;;  %v214_v50 = vpop.f32.mrf.mxu0 }
  0xa1   : > { %v375_v51 = vpop.f32.mrf.mxu3  ;;  %v258_v52 = vpop.f32.mrf.mxu1  ;;  %v316_v57 = vadd.f32 %v311_v49, %v257_v53 }
  0xa2   : > { %v259_v56 = vadd.f32 %v258_v52, %v214_v50 }
  0xa3   : > { %v380_v59 = vadd.f32 %v375_v51, %v316_v57 }
  0xa8   : > { %v313_v54 = vpop.f32.mrf.mxu2  ;;  %v432_v55 = vpop.f32.mrf.mxu0 }
  0xa9   : > { %v317_v58 = vadd.f32 %v313_v54, %v259_v56  ;;  %v377_v60 = vpop.f32.mrf.mxu3  ;;  %v437_v62 = vadd.f32 %v432_v55, %v380_v59 }
  0xab   : > { %v381_v61 = vadd.f32 %v377_v60, %v317_v58  ;;  %v449_v3 = vmul.f32 %v437_v62, %v437_v62 }
  0xb0   : > { %v434_v63 = vpop.f32.mrf.mxu0 }
  0xb1   : > { %v438_v0 = vadd.f32 %v434_v63, %v381_v61 }
  0xb3   : > { %v440_v1 = vsel %vm439_vm1, %v438_v0, 0.0  ;;  %v450_v2 = vmul.f32 %v438_v0, %v438_v0 }
  0xb4   : > { %v441_v4 = vadd.f32 %v440_v1, %v437_v62 }
  0xb5   : > { %v451_v5 = vsel %vm439_vm1, %v450_v2, 0.0 }
  0xb6   : > { %v442_v6 = vrot.slane %v441_v4, 4  ;;  %v452_v7 = vadd.f32 %v451_v5, %v449_v3 }
  0xb8   : > { %v443_v8 = vadd.f32 %v442_v6, %v441_v4  ;;  %v453_v9 = vrot.slane %v452_v7, 4 }
  0xba   : > { %v444_v10 = vrot.slane %v443_v8, 2  ;;  %v454_v11 = vadd.f32 %v453_v9, %v452_v7 }
  0xbc   : > { %v445_v12 = vadd.f32 %v444_v10, %v443_v8  ;;  %v455_v13 = vrot.slane %v454_v11, 2 }
  0xbe   : > { %v446_v14 = vrot.slane %v445_v12, 1  ;;  %v456_v15 = vadd.f32 %v455_v13, %v454_v11 }
  0xc0   : > { %v447_v16 = vadd.f32 %v446_v14, %v445_v12  ;;  %v457_v17 = vrot.slane %v456_v15, 1 }
  0xc2   : > { %v458_v18 = vadd.f32 %v457_v17, %v456_v15  ;;  %460 = vst [vmem:[%s141_s4] sm:$0x1] %v447_v16 }
  0xc4   : > { %461 = vst [vmem:[%s141_s4 + $0x1] sm:$0x1] %v458_v18 }
  0xc5 PF: > { %s12_s9 = sadd.s32 1, %s677_s9  }
  0xc6   : > { %p9_p4 = scmp.ge.s32.totalorder %s12_s9, 4  }
  0xc8   :  { %11 = sbr.rel (!%p9_p4) target bundleno = 1 (0x1), region = 62 }

// kernel: conv_block_forward.3
= control target key start
LH: loop header
LB: loop body
LE: loop exit
PB: predicated region body
PF: predicated region fallthrough
CT: control target
= control target key end

     0   :  { %s759_s15 = smov 0   ;;  %s858_s0 = inlined_call_operand.vmem [shape: bf16[2,16,64], index: 0, kind: input, shape index: {}]   ;;  %s859_s1 = inlined_call_operand.vmem [shape: bf16[5,64,128], index: 1, kind: input, shape index: {}]   ;;  %s860_s2 = inlined_call_operand.vmem [shape: f32[1,128], index: 2, kind: input, shape index: {}]   ;;  %s861_s3 = inlined_call_operand.vmem [shape: f32[1,128], index: 3, kind: input, shape index: {}]   ;;  %s862_s4 = inlined_call_operand.vmem [shape: f32[2,12,128], index: 4, kind: output, shape index: {}]  }
   0x1 LB: > { %s566_s16 = sadd.s32 4294967295, %s732_s15   ;;  %p570_p0 = scmp.ge.s32.totalorder %s732_s15, 1  ;;  %s732_s15 = sphi %s759_s15, %s14_s15  }
   0x2   : > { %p162_p1 = scmp.lt.s32.totalorder %s732_s15, 3 }
   0x4   : > { %p163_p2 = pnand %p570_p0, %p162_p1 }
   0x5   : > { %p188_p3 = scmp.lt.s32.totalorder (!%p163_p2), %s566_s16, 1 }
   0x6   : > { %166 = sbr.rel (%p163_p2) target bundleno = 186 (0xba), region = 36 }
   0xb   : > { %v703_v0 = vld [vmem:[%s859_s1 + $0x38] sm:$0xff]  ;;  %v702_v4 = vld [vmem:[%s859_s1 + $0x30] sm:$0xff]  ;;  %s864_s16 = smov (!%p188_p3, %s566_s16), 1  ;;  %v701_v8 = vld [vmem:[%s859_s1 + $0x28] sm:$0xff]  ;;  %vm255_vm0 = vcmask 523264  }
   0xc   : > { %v699_v1 = vld [vmem:[%s859_s1 + $0x18] sm:$0xff]  ;;  %263 = vmatpush.bf16.msra.mxu0 %v703_v0  ;;  %v698_v5 = vld [vmem:[%s859_s1 + $0x10] sm:$0xff]  ;;  %s694_s7 = sshll.u32 %s864_s16, 3  ;;  %v697_v9 = vld [vmem:[%s859_s1 + $0x8] sm:$0xff]  ;;  %s695_s17 = sshll.u32 %s864_s16, 4 }
   0xd   : > { %v707_v2 = vld [vmem:[%s859_s1 + $0x58] sm:$0xff]  ;;  %307 = vmatpush.bf16.msra.mxu1 %v699_v1  ;;  %v706_v6 = vld [vmem:[%s859_s1 + $0x50] sm:$0xff]  ;;  %s803_s14 = scalar_lea.vmem %s858_s0, %s694_s7  ;;  %v705_v13 = vld [vmem:[%s859_s1 + $0x48] sm:$0xff]  ;;  %s197_s20 = scalar_lea.vmem %s862_s4, %s695_s17 }
   0xe   : > { %v711_v3 = vld [vmem:[%s859_s1 + $0x78] sm:$0xff]  ;;  %362 = vmatpush.bf16.msra.mxu2 %v707_v2  ;;  %v710_v7 = vld [vmem:[%s859_s1 + $0x70] sm:$0xff]  ;;  %v199_v10 = vld [vmem:[%s803_s14] sm:$0xff]  }
   0xf   : > { %426 = vmatpush.bf16.msra.mxu3 %v711_v3  ;;  %v209_v11 = vld [vmem:[%s803_s14 + $0x4] sm:$0x7]  ;;  %v709_v14 = vld [vmem:[%s859_s1 + $0x68] sm:$0xff]  ;;  %v221_v15 = vunpack.c.l.b16 %v199_v10  ;;  %v317_v17 = vld [vmem:[%s803_s14] sm:$0xe]  ;;  %v385_v18 = vunpack.c.h.b16 %v199_v10 }
  0x10   : > { %264 = vmatpush.bf16.msra.mxu0 %v702_v4  ;;  %v200_v12 = vld [vmem:[%s803_s14 + $0x4] sm:$0x3]  ;;  %v222_v16 = vunpack.c.l.b16 %v209_v11  ;;  %v328_v19 = vunpack.c.l.b16 %v317_v17  ;;  %v715_v32 = vld [vmem:[%s859_s1 + $0x98] sm:$0xff]  ;;  %v714_v40 = vld [vmem:[%s859_s1 + $0x90] sm:$0xff] }
  0x11   : > { %308 = vmatpush.bf16.msra.mxu1 %v698_v5  ;;  %v274_v21 = vunpack.c.l.b16 %v200_v12  ;;  %v700_v22 = vld [vmem:[%s859_s1 + $0x20] sm:$0xff]  ;;  %v713_v42 = vld [vmem:[%s859_s1 + $0x88] sm:$0xff] }
  0x12   : > { %363 = vmatpush.bf16.msra.mxu2 %v706_v6  ;;  %v223_v20 = vpack.c.b16 %v222_v16, %v221_v15  ;;  %v696_v23 = vld [vmem:[%s859_s1] sm:$0xff]  ;;  %v329_v24 = vpack.c.b16 %v222_v16, %v328_v19  ;;  %v386_v25 = vpack.c.b16 %v385_v18, %v328_v19 }
  0x13   : > { %427 = vmatpush.bf16.msra.mxu3 %v710_v7  ;;  %v704_v26 = vld [vmem:[%s859_s1 + $0x40] sm:$0xff]  ;;  %v275_v34 = vpack.c.b16 %v274_v21, %v221_v15 }
  0x14   : > { %265 = vmatpush.bf16.msra.mxu0 %v701_v8  ;;  %v708_v27 = vld [vmem:[%s859_s1 + $0x60] sm:$0xff]  ;;  %v225_v28 = vshrl.u32 %v223_v20, 16  ;;  %v227_v29 = vshll.u32 %v223_v20, 16  ;;  %v388_v30 = vshrl.u32 %v386_v25, 16  ;;  %v391_v31 = vshll.u32 %v386_v25, 16 }
  0x15   : > { %309 = vmatpush.bf16.msra.mxu1 %v697_v9  ;;  %v330_v35 = vrot.slane %v329_v24, 1  ;;  %v438_v41 = vld [vmem:[%s803_s14] sm:$0xc]  ;;  %v724_v56 = vld [vmem:[%s860_s2] ss:$0 sm:$0xff] }
  0x16   : > { %364 = vmatpush.bf16.msra.mxu2 %v705_v13  ;;  %v229_v33 = vrot.slane %v227_v29, 1  ;;  %v390_v36 = vrot.slane %v388_v30, 1  ;;  %v393_v37 = vrot.slane %v391_v31, 2  ;;  %v449_v43 = vunpack.c.l.b16 %v438_v41  ;;  %v712_v44 = vld [vmem:[%s859_s1 + $0x80] sm:$0xff] }
  0x17   : > { %428 = vmatpush.bf16.msra.mxu3 %v709_v14  ;;  %v725_v61 = vld [vmem:[%s861_s3] ss:$0 sm:$0xff] }
  0x18   : > { %266 = vmatpush.bf16.msra.mxu0 %v700_v22  ;;  %v230_v38 = vor.u32 %v229_v33, %v225_v28  ;;  %v394_v39 = vor.u32 %v393_v37, %v390_v36  ;;  %v450_v45 = vpack.c.b16 %v385_v18, %v449_v43 }
  0x19   : > { %310 = vmatpush.bf16.msra.mxu1 %v696_v23 }
  0x1a   : > { %365 = vmatpush.bf16.msra.mxu2 %v704_v26  ;;  %v451_v46 = vrot.slane %v450_v45, 2 }
  0x1b   : > { %429 = vmatpush.bf16.msra.mxu3 %v708_v27  ;;  %599 = vmatmul.msk.bf16.vlgmr.msra.gmra.mxu0 %vm255_vm0, %v230_v38 }
  0x1c   : > { %483 = vmatpush.bf16.msrb.mxu0 %v715_v32  ;;  %616 = vmatmul.msk.bf16.vlgmr.msra.gmra.mxu1 %vm255_vm0, %v275_v34 }
  0x1d   : > { %641 = vmatmul.msk.bf16.vlgmr.msra.gmra.mxu2 %vm255_vm0, %v330_v35 }
  0x1e   : > { %666 = vmatmul.msk.bf16.vlgmr.msra.gmra.mxu3 %vm255_vm0, %v394_v39 }
  0x20   : > { %484 = vmatpush.bf16.msrb.mxu0 %v714_v40 }
  0x24   : > { %485 = vmatpush.bf16.msrb.mxu0 %v713_v42 }
  0x28   : > { %486 = vmatpush.bf16.msrb.mxu0 %v712_v44 }
  0x2b   : > { %691 = vmatmul.msk.bf16.vlgmr.msrb.gmra.mxu0 %vm255_vm0, %v451_v46 }
  0x98   : > { %v268_v47 = vpop.f32.mrf.mxu0 }
  0x99   : > { %v312_v48 = vpop.f32.mrf.mxu1 }
  0x9a   : > { %v313_v51 = vadd.f32 %v312_v48, %v268_v47 }
  0xa0   : > { %v367_v49 = vpop.f32.mrf.mxu2  ;;  %v270_v50 = vpop.f32.mrf.mxu0 }
  0xa1   : > { %v372_v52 = vadd.f32 %v367_v49, %v313_v51  ;;  %v431_v53 = vpop.f32.mrf.mxu3  ;;  %v314_v54 = vpop.f32.mrf.mxu1 }
  0xa2   : > { %v315_v59 = vadd.f32 %v314_v54, %v270_v50 }
  0xa3   : > { %v436_v55 = vadd.f32 %v431_v53, %v372_v52 }
  0xa8   : > { %v369_v57 = vpop.f32.mrf.mxu2  ;;  %v488_v58 = vpop.f32.mrf.mxu0 }
  0xa9   : > { %v493_v60 = vadd.f32 %v488_v58, %v436_v55  ;;  %v373_v62 = vadd.f32 %v369_v57, %v315_v59  ;;  %v433_v1 = vpop.f32.mrf.mxu3 }
  0xab   : > { %v499_v63 = vmul.f32 %v724_v56, %v493_v60  ;;  %v437_v2 = vadd.f32 %v433_v1, %v373_v62 }
  0xad   : > { %v505_v0 = vadd.f32 %v725_v61, %v499_v63 }
  0xaf   : > { %v507_v3 = vmax.f32 %v505_v0, 0.0 }
  0xb0   : > { %v490_v4 = vpop.f32.mrf.mxu0 }
  0xb1   : > { %509 = vst [vmem:[%s197_s20] sm:$0xff] %v507_v3  ;;  %v494_v5 = vadd.f32 %v490_v4, %v437_v2 }
  0xb3   : > { %v500_v6 = vmul.f32 %v724_v56, %v494_v5 }
  0xb5   : > { %v506_v7 = vadd.f32 %v725_v61, %v500_v6 }
  0xb7   : > { %v508_v8 = vmax.f32 %v506_v7, 0.0 }
  0xb9   : > { %510 = vst [vmem:[%s197_s20 + $0x8] sm:$0xf] %v508_v8 }
  0xba PF: > { %s14_s15 = sadd.s32 1, %s732_s15  }
  0xbb   : > { %p11_p4 = scmp.ge.s32.totalorder %s14_s15, 4  }
  0xbd   :  { %13 = sbr.rel (!%p11_p4) target bundleno = 1 (0x1), region = 70 }

</bundles_post_ra>
